<compile_context>
chip_gen: v7x
topology: tpu7x:2x2x1
jax: 0.10.0
libtpu: 0.0.40
codegen_flags: <defaults>
</compile_context>

<pallas_src>
import functools

import jax
import jax.numpy as jnp
from jax.experimental import pallas as pl
from jax.experimental.pallas import tpu as pltpu

_SQRT_HALF = 0.7071067811865476


def _gelu(h, exact):
    if exact:
        # exact GELU (PyTorch nn.GELU default, approximate='none'), kept in f32.
        return 0.5 * h * (1.0 + jax.lax.erf(h * jnp.float32(_SQRT_HALF)))
    # tanh approximation -> transcendental rides the EUP slot (nearly free).
    return jax.nn.gelu(h, approximate=True)


def _mlp_kernel_resident(x_ref, w1_ref, b1_ref, w2_ref, b2_ref, o_ref, *, exact_gelu):
    # x_ref: (tm, D_in), w1_ref: (D_in, H), b1_ref: (1, H)
    # w2_ref: (H, D_out), b2_ref: (1, D_out), o_ref: (tm, D_out)
    h = jnp.dot(x_ref[...], w1_ref[...], preferred_element_type=jnp.float32)
    h = h + b1_ref[...].astype(jnp.float32)
    h = _gelu(h, exact_gelu)
    # dropout(p=0.0) is identity
    h = h.astype(w2_ref.dtype)          # bf16 fast path on the MXU
    o = jnp.dot(h, w2_ref[...], preferred_element_type=jnp.float32)
    o = o + b2_ref[...].astype(jnp.float32)
    o_ref[...] = o.astype(o_ref.dtype)


def _mlp_kernel_htiled(x_ref, w1_ref, b1_ref, w2_ref, b2_ref, o_ref, acc_ref, *,
                       exact_gelu):
    # Hidden dim tiled: x_ref (tm, D_in), w1_ref (D_in, th), b1_ref (1, th),
    # w2_ref (th, D_out), b2_ref (1, D_out), acc_ref (tm, D_out) f32 scratch.
    j = pl.program_id(1)

    @pl.when(j == 0)
    def _():
        acc_ref[...] = jnp.zeros_like(acc_ref)

    h = jnp.dot(x_ref[...], w1_ref[...], preferred_element_type=jnp.float32)
    h = h + b1_ref[...].astype(jnp.float32)
    h = _gelu(h, exact_gelu)
    h = h.astype(w2_ref.dtype)
    acc_ref[...] += jnp.dot(h, w2_ref[...], preferred_element_type=jnp.float32)

    @pl.when(j == pl.num_programs(1) - 1)
    def _():
        o_ref[...] = (acc_ref[...] + b2_ref[...].astype(jnp.float32)).astype(o_ref.dtype)


def _round_up(v, mult):
    return ((v + mult - 1) // mult) * mult


@functools.lru_cache(maxsize=1)
def _vmem_capacity_bytes():
    try:
        return int(pltpu.get_tpu_info().vmem_capacity_bytes)
    except Exception:
        return 64 << 20  # conservative per-TC fallback (legal on v5e/v6e/v7x)


@functools.partial(jax.jit,
                   static_argnames=("tm", "th_target", "exact_gelu",
                                    "force_hidden_tile"))
def mlp_pallas(x, w1, b1, w2, b2, *, tm=None, th_target=1024, exact_gelu=True,
               force_hidden_tile=None):
    """x: (..., in_features); weights stored as (in, hidden) and (hidden, out).

    In production use, in/hidden/out features should be multiples of 128
    (ViT dims 768/1024/3072/4096 already are) so stores stay lane-dense.
    """
    orig_shape = x.shape
    d_in = orig_shape[-1]
    x2d = x.reshape(-1, d_in)
    m = x2d.shape[0]
    h_dim = w1.shape[1]
    d_out = w2.shape[1]

    act_isz = jnp.dtype(x.dtype).itemsize
    w_isz = jnp.dtype(w1.dtype).itemsize

    vmem_cap = _vmem_capacity_bytes()
    vmem_budget = int(0.85 * vmem_cap)       # leave headroom for Mosaic scratch
    headroom = 4 << 20

    # Sublane alignment: 8 rows for f32 activations, 16 for bf16 (packed).
    align = 16 if x.dtype == jnp.bfloat16 else 8
    m_padded = _round_up(m, align)

    # Generation-aware token tile: 512 on 128 MiB parts (v5e/v6e), 256 on v7x.
    if tm is None:
        tm = 512 if vmem_cap >= (96 << 20) else 256
    tm_eff = min(_round_up(tm, align), m_padded)

    # Megacore friendliness: never leave a 2-TC chip with a single token tile
    # when there is enough work to split (extra grid step is ~0.35us on 1-TC).
    if pl.cdiv(m_padded, tm_eff) < 2 and m_padded >= 2 * align:
        tm_eff = _round_up(pl.cdiv(m_padded, 2), align)
    n_token_tiles = pl.cdiv(m, tm_eff)

    # Residency with single-buffered (grid-invariant) weights + biases.
    resident_vmem = (
        2 * tm_eff * d_in * act_isz            # x tile, double-buffered
        + 2 * tm_eff * d_out * act_isz         # out tile, double-buffered
        + (d_in * h_dim + h_dim * d_out) * w_isz   # weights, single-buffered
        + (h_dim + d_out) * w_isz                  # biases, single-buffered
        + tm_eff * h_dim * 4                   # f32 intermediate (tm, H)
        + tm_eff * d_out * 4                   # f32 fc2 result before cast
    )

    # Decide whether the hidden dim must be tiled to fit the per-TC VMEM budget.
    th = None
    if force_hidden_tile is not None:
        f = int(force_hidden_tile)
        if f % 128 == 0 and h_dim % f == 0:
            th = f
    elif resident_vmem + headroom > vmem_budget and h_dim % 128 == 0:
        cand = max((th_target // 128) * 128, 128)
        while cand >= 128:
            if h_dim % cand == 0:
                th = cand
                break
            cand -= 128

    if th is not None:
        vmem_needed = (
            2 * tm_eff * d_in * act_isz
            + 2 * tm_eff * d_out * act_isz
            + 2 * (d_in * th + th * d_out) * w_isz   # chunked weights, double-buffered
            + 2 * th * w_isz + d_out * w_isz         # b1 chunks double, b2 single
            + tm_eff * th * 4                        # f32 intermediate (tm, th)
            + tm_eff * d_out * 4                     # f32 accumulator scratch
        )
    else:
        vmem_needed = resident_vmem
    vmem_limit = int(min(max(vmem_needed + headroom, 32 << 20), vmem_budget))

    b1_2d = b1.reshape(1, h_dim)
    b2_2d = b2.reshape(1, d_out)

    cost = pl.CostEstimate(
        flops=2 * m * h_dim * (d_in + d_out),
        transcendentals=m * h_dim,
        bytes_accessed=(m * d_in + m * d_out) * act_isz
        + (d_in * h_dim + h_dim * d_out + h_dim + d_out) * w_isz,
    )

    if th is None:
        # Weight-stationary path: both weight matrices resident, single-buffered.
        kernel = functools.partial(_mlp_kernel_resident, exact_gelu=exact_gelu)
        grid = (n_token_tiles,)
        in_specs = [
            pl.BlockSpec((tm_eff, d_in), lambda i: (i, 0)),                 # x tile
            pl.BlockSpec((d_in, h_dim), lambda i: (0, 0),
                         pipeline_mode=pl.Buffered(1)),                     # w1
            pl.BlockSpec((1, h_dim), lambda i: (0, 0),
                         pipeline_mode=pl.Buffered(1)),                     # b1
            pl.BlockSpec((h_dim, d_out), lambda i: (0, 0),
                         pipeline_mode=pl.Buffered(1)),                     # w2
            pl.BlockSpec((1, d_out), lambda i: (0, 0),
                         pipeline_mode=pl.Buffered(1)),                     # b2
        ]
        out_specs = pl.BlockSpec((tm_eff, d_out), lambda i: (i, 0))
        scratch_shapes = []
        dim_sem = ("parallel",)
    else:
        # Hidden-dim-tiled path: stream weight chunks, accumulate fc2 partials.
        kernel = functools.partial(_mlp_kernel_htiled, exact_gelu=exact_gelu)
        n_h_tiles = h_dim // th
        grid = (n_token_tiles, n_h_tiles)
        in_specs = [
            pl.BlockSpec((tm_eff, d_in), lambda i, j: (i, 0)),              # x tile
            pl.BlockSpec((d_in, th), lambda i, j: (0, j)),                  # w1 chunk
            pl.BlockSpec((1, th), lambda i, j: (0, j)),                     # b1 chunk
            pl.BlockSpec((th, d_out), lambda i, j: (j, 0)),                 # w2 chunk
            pl.BlockSpec((1, d_out), lambda i, j: (0, 0),
                         pipeline_mode=pl.Buffered(1)),                     # b2
        ]
        out_specs = pl.BlockSpec((tm_eff, d_out), lambda i, j: (i, 0))
        scratch_shapes = [pltpu.VMEM((tm_eff, d_out), jnp.float32)]
        dim_sem = ("parallel", "arbitrary")

    out = pl.pallas_call(
        kernel,
        out_shape=jax.ShapeDtypeStruct((m, d_out), x.dtype),
        grid_spec=pltpu.PrefetchScalarGridSpec(
            num_scalar_prefetch=0,
            grid=grid,
            in_specs=in_specs,
            out_specs=out_specs,
            scratch_shapes=scratch_shapes,
        ),
        compiler_params=pltpu.CompilerParams(
            dimension_semantics=dim_sem,
            vmem_limit_bytes=vmem_limit,
        ),
        cost_estimate=cost,
    )(x2d, w1, b1_2d, w2, b2_2d)

    return out.reshape(*orig_shape[:-1], d_out)


def init_mlp_params(key, in_features, hidden_features, out_features,
                    dtype=jnp.float32):
    """Deterministic init mimicking nn.Linear default (uniform +/- 1/sqrt(fan_in)).
    Weights are stored transposed relative to PyTorch (as (in, out)) so the
    kernel computes x @ W directly."""
    k1, k2, k3, k4 = jax.random.split(key, 4)
    bound1 = 1.0 / jnp.sqrt(in_features)
    bound2 = 1.0 / jnp.sqrt(hidden_features)
    w1 = jax.random.uniform(k1, (in_features, hidden_features), dtype,
                            minval=-bound1, maxval=bound1)
    b1 = jax.random.uniform(k2, (hidden_features,), dtype,
                            minval=-bound1, maxval=bound1)
    w2 = jax.random.uniform(k3, (hidden_features, out_features), dtype,
                            minval=-bound2, maxval=bound2)
    b2 = jax.random.uniform(k4, (out_features,), dtype,
                            minval=-bound2, maxval=bound2)
    return w1, b1, w2, b2


def _mlp_ref(x, w1, b1, w2, b2):
    h = x @ w1 + b1
    h = 0.5 * h * (1.0 + jax.lax.erf(h * _SQRT_HALF))
    return h @ w2 + b2


if __name__ == "__main__":
    # TODO(synk): only the Mlp sub-block of the VisionTransformer Block is fused
    # here; attention / patch-embed / cross-attention / DSTANet stay in plain XLA.
    key = jax.random.PRNGKey(0)

    # --- test 1: small shapes, weight-stationary path (f32 + bf16) ---
    batch, seq = 2, 8
    in_features, hidden_features, out_features = 32, 64, 32
    kx, kp, kx2, kp2 = jax.random.split(key, 4)
    x = jax.random.normal(kx, (batch, seq, in_features), dtype=jnp.float32)
    w1, b1, w2, b2 = init_mlp_params(kp, in_features, hidden_features, out_features)

    out = jax.block_until_ready(mlp_pallas(x, w1, b1, w2, b2))
    ref = _mlp_ref(x, w1, b1, w2, b2)
    assert out.shape == (batch, seq, out_features)
    assert jnp.allclose(out, ref, atol=1e-5, rtol=1e-5)

    out_bf16 = jax.block_until_ready(mlp_pallas(
        x.astype(jnp.bfloat16), w1.astype(jnp.bfloat16), b1.astype(jnp.bfloat16),
        w2.astype(jnp.bfloat16), b2.astype(jnp.bfloat16)))
    assert out_bf16.shape == (batch, seq, out_features)
    assert jnp.allclose(out_bf16.astype(jnp.float32), ref, atol=8e-2, rtol=8e-2)

    # --- test 2: exercise the hidden-dim-tiled accumulator path ---
    b2_, s2_ = 2, 64
    din2, dh2, dout2 = 256, 512, 256
    x2 = jax.random.normal(kx2, (b2_, s2_, din2), dtype=jnp.float32)
    w1_2, b1_2, w2_2, b2_2 = init_mlp_params(kp2, din2, dh2, dout2)
    out2 = jax.block_until_ready(
        mlp_pallas(x2, w1_2, b1_2, w2_2, b2_2, force_hidden_tile=128))
    ref2 = _mlp_ref(x2, w1_2, b1_2, w2_2, b2_2)
    assert out2.shape == (b2_, s2_, dout2)
    assert jnp.allclose(out2, ref2, atol=1e-4, rtol=1e-4)

    print("KERNEL_OK")
</pallas_src>

<mosaic_0001>
module attributes {stable_mosaic.version = 11 : i64} {
  func.func @_mlp_kernel_resident(%arg0: i32, %arg1: memref<8x32xf32, #tpu.memory_space<vmem>>, %arg2: memref<32x64xf32, #tpu.memory_space<vmem>>, %arg3: memref<1x64xf32, #tpu.memory_space<vmem>>, %arg4: memref<64x32xf32, #tpu.memory_space<vmem>>, %arg5: memref<1x32xf32, #tpu.memory_space<vmem>>, %arg6: memref<8x32xf32, #tpu.memory_space<vmem>>) attributes {dimension_semantics = [#tpu.dimension_semantics<parallel>], iteration_bounds = array<i64: 2>, scalar_prefetch = 0 : i64, scratch_operands = 0 : i64, tpu.core_type = #tpu.core_type<tc>, window_params = [{transform_indices = @transform_0, window_bounds = array<i64: 8, 32>}, {pipeline_mode = #tpu.pipeline_mode<synchronous>, transform_indices = @transform_1, window_bounds = array<i64: 32, 64>}, {pipeline_mode = #tpu.pipeline_mode<synchronous>, transform_indices = @transform_2, window_bounds = array<i64: 1, 64>}, {pipeline_mode = #tpu.pipeline_mode<synchronous>, transform_indices = @transform_3, window_bounds = array<i64: 64, 32>}, {pipeline_mode = #tpu.pipeline_mode<synchronous>, transform_indices = @transform_4, window_bounds = array<i64: 1, 32>}, {transform_indices = @transform_5, window_bounds = array<i64: 8, 32>}]} {
    %c0 = arith.constant 0 : index
    %c0_0 = arith.constant 0 : index
    %0 = vector.load %arg1[%c0, %c0_0] : memref<8x32xf32, #tpu.memory_space<vmem>>, vector<8x32xf32>
    %c0_1 = arith.constant 0 : index
    %c0_2 = arith.constant 0 : index
    %1 = vector.load %arg2[%c0_1, %c0_2] : memref<32x64xf32, #tpu.memory_space<vmem>>, vector<32x64xf32>
    %cst = arith.constant dense<0.000000e+00> : vector<8x64xf32>
    %2 = tpu.matmul %0, %1, %cst {dimension_numbers = #tpu.dot_dimension_numbers<[1], [0], [0], [1], [0, 0, 1, 1], [], []>} : vector<8x32xf32>, vector<32x64xf32>, vector<8x64xf32> -> vector<8x64xf32>
    %c0_3 = arith.constant 0 : index
    %c0_4 = arith.constant 0 : index
    %3 = vector.load %arg3[%c0_3, %c0_4] : memref<1x64xf32, #tpu.memory_space<vmem>>, vector<1x64xf32>
    %4 = vector.broadcast %3 : vector<1x64xf32> to vector<8x64xf32>
    %5 = arith.addf %2, %4 : vector<8x64xf32>
    %cst_5 = arith.constant 5.000000e-01 : f32
    %6 = vector.broadcast %cst_5 : f32 to vector<8x64xf32>
    %7 = arith.mulf %6, %5 : vector<8x64xf32>
    %cst_6 = arith.constant 0.707106769 : f32
    %8 = vector.broadcast %cst_6 : f32 to vector<8x64xf32>
    %9 = arith.mulf %5, %8 : vector<8x64xf32>
    %10 = math.erf %9 : vector<8x64xf32>
    %cst_7 = arith.constant 1.000000e+00 : f32
    %11 = vector.broadcast %cst_7 : f32 to vector<8x64xf32>
    %12 = arith.addf %11, %10 : vector<8x64xf32>
    %13 = arith.mulf %7, %12 : vector<8x64xf32>
    %c0_8 = arith.constant 0 : index
    %c0_9 = arith.constant 0 : index
    %14 = vector.load %arg4[%c0_8, %c0_9] : memref<64x32xf32, #tpu.memory_space<vmem>>, vector<64x32xf32>
    %cst_10 = arith.constant dense<0.000000e+00> : vector<8x32xf32>
    %15 = tpu.matmul %13, %14, %cst_10 {dimension_numbers = #tpu.dot_dimension_numbers<[1], [0], [0], [1], [0, 0, 1, 1], [], []>} : vector<8x64xf32>, vector<64x32xf32>, vector<8x32xf32> -> vector<8x32xf32>
    %c0_11 = arith.constant 0 : index
    %c0_12 = arith.constant 0 : index
    %16 = vector.load %arg5[%c0_11, %c0_12] : memref<1x32xf32, #tpu.memory_space<vmem>>, vector<1x32xf32>
    %17 = vector.broadcast %16 : vector<1x32xf32> to vector<8x32xf32>
    %18 = arith.addf %15, %17 : vector<8x32xf32>
    %c0_13 = arith.constant 0 : index
    %c0_14 = arith.constant 0 : index
    %19 = vector.load %arg6[%c0_13, %c0_14] : memref<8x32xf32, #tpu.memory_space<vmem>>, vector<8x32xf32>
    tpu.vector_store %arg6[%c0_13, %c0_14], %18 {strides = array<i32>} : memref<8x32xf32, #tpu.memory_space<vmem>>, vector<8x32xf32>,
    return
  }
  func.func @transform_0(%arg0: i32) -> (i32, i32) {
    %c0_i32 = arith.constant 0 : i32
    %c0_i32_0 = arith.constant 0 : i32
    return %arg0, %c0_i32 : i32, i32
  }
  func.func @transform_1(%arg0: i32) -> (i32, i32) {
    %c0_i32 = arith.constant 0 : i32
    %c0_i32_0 = arith.constant 0 : i32
    %c0_i32_1 = arith.constant 0 : i32
    return %c0_i32, %c0_i32_0 : i32, i32
  }
  func.func @transform_2(%arg0: i32) -> (i32, i32) {
    %c0_i32 = arith.constant 0 : i32
    %c0_i32_0 = arith.constant 0 : i32
    %c0_i32_1 = arith.constant 0 : i32
    return %c0_i32, %c0_i32_0 : i32, i32
  }
  func.func @transform_3(%arg0: i32) -> (i32, i32) {
    %c0_i32 = arith.constant 0 : i32
    %c0_i32_0 = arith.constant 0 : i32
    %c0_i32_1 = arith.constant 0 : i32
    return %c0_i32, %c0_i32_0 : i32, i32
  }
  func.func @transform_4(%arg0: i32) -> (i32, i32) {
    %c0_i32 = arith.constant 0 : i32
    %c0_i32_0 = arith.constant 0 : i32
    %c0_i32_1 = arith.constant 0 : i32
    return %c0_i32, %c0_i32_0 : i32, i32
  }
  func.func @transform_5(%arg0: i32) -> (i32, i32) {
    %c0_i32 = arith.constant 0 : i32
    %c0_i32_0 = arith.constant 0 : i32
    return %arg0, %c0_i32 : i32, i32
  }
}

</mosaic_0001>

<bundles_post_ra>
// kernel: mlp_pallas.1
= control target key start
LH: loop header
LB: loop body
LE: loop exit
PB: predicated region body
PF: predicated region fallthrough
CT: control target
= control target key end

     0   :  { %10 = vsyncpa [#allocation3], 0  ;;  %s836_s0 = inlined_call_operand.vmem [shape: f32[16,32], index: 0, kind: input, shape index: {}]   ;;  %s837_s1 = inlined_call_operand.vmem [shape: f32[32,64], index: 1, kind: input, shape index: {}]   ;;  %s838_s2 = inlined_call_operand.vmem [shape: f32[1,64], index: 2, kind: input, shape index: {}]   ;;  %s839_s3 = inlined_call_operand.vmem [shape: f32[64,32], index: 3, kind: input, shape index: {}]   ;;  %s840_s4 = inlined_call_operand.vmem [shape: f32[1,32], index: 4, kind: input, shape index: {}]   ;;  %s841_s5 = inlined_call_operand.hbm [shape: f32[16,32], index: 5, kind: output, shape index: {}]  }
   0x1   :  { %12 = vsyncpa [#allocation3 + $0x1], 0  ;;  %s692_s18 = smov 0   ;;  %s694_s19 = smov 0  }
   0x2   :  { %s696_s20 = smov 0   ;;  %s698_s21 = smov 0  }
   0x3 LB: > { %s713_s22 = sadd.s32 4294967295, %s656_s21   ;;  %s474_s23 = sadd.s32 4294967294, %s656_s21   ;;  %s656_s21 = sphi %s698_s21, %s847_s21   ;;  %s652_s20 = sphi %s696_s20, %s846_s20   ;;  %s648_s19 = sphi %s694_s19, %s845_s19   ;;  %s644_s18 = sphi %s692_s18, %s844_s18  }
   0x4   : > { %s717_s24 = sadd.s32 1, %s656_s21   ;;  %s135_s25 = sadd.s32 1, %s652_s20 }
   0x5   : > { %s132_s26 = ssub.s32 %s656_s21, %s717_s24  ;;  %p145_p0 = scmp.ne.s32.totalorder %s652_s20, %s648_s19 }
   0x6   : > { %p133_p1 = scmp.eq.s32.totalorder %s132_s26, 0  ;;  %p146_p2 = scmp.eq.s32.totalorder %s713_s22, 1 }
   0x7   : > { %p151_p3 = scmp.ne.s32.totalorder %s648_s19, %s644_s18  ;;  %p152_p4 = scmp.eq.s32.totalorder %s474_s23, 1 }
   0x8   : > { %s728_s27 = scalar_select %p133_p1, %s652_s20, %s135_s25  }
   0x9   : > { %p730_p5 = por %p146_p2, %p145_p0  ;;  %p734_p6 = por %p152_p4, %p151_p3 }
   0xa   : > { %p477_p7 = scmp.ge.s32.totalorder %s656_s21, 1  ;;  %p189_p8 = scmp.lt.s32.totalorder %s656_s21, 3 }
   0xc   : > { %p190_p9 = pnand %p477_p7, %p189_p8 }
   0xd   : > { %v221_v0 = vld [vmem:[%s837_s1] sm:$0xff] (!%p190_p9)  ;;  %v222_v1 = vld [vmem:[%s837_s1 + $0x8] sm:$0xff] (!%p190_p9)  ;;  %v223_v2 = vld [vmem:[%s837_s1 + $0x10] sm:$0xff] (!%p190_p9)  ;;  %v658_v3 = vmov (!%p190_p9), 0.0|0.0   ;;  %vm659_vm0 = vmmov (!%p190_p9), 0   ;;  %v660_v6 = vmov (!%p190_p9), 0.0  }
   0xe   : > { %193 = sbr.rel (%p190_p9) target bundleno = 485 (0x1e5), region = 40  ;;  %532 = vmatprep.subr.bf16.mxu0 (!%p190_p9), %v658_v3  ;;  %v533_v4 = vpack.c.bf16 (!%p190_p9), %v222_v1, %v221_v0  ;;  %v224_v5 = vld [vmem:[%s837_s1 + $0x18] sm:$0xff] (!%p190_p9)  ;;  %510 = vmatprep.mubr.msk.f32.mxu0 (!%p190_p9), %vm659_vm0, %v660_v6  ;;  %p216_p10 = scmp.lt.s32.totalorder (!%p190_p9), %s713_s22, 1  ;;  %vm232_vm1 = vcmask (!%p190_p9), 261120   ;;  %v311_v9 = vld [vmem:[%s839_s3] sm:$0xff] (!%p190_p9)  ;;  %v312_v10 = vld [vmem:[%s839_s3 + $0x8] sm:$0xff] (!%p190_p9) }
   0xf   : > { %538 = vmatprep.subr.bf16.mxu1 (!%p190_p9), %v658_v3  ;;  %529 = vmatprep.mubr.msk.f32.mxu1 (!%p190_p9), %vm659_vm0, %v660_v6  ;;  %v536_v7 = vpack.c.bf16 (!%p190_p9), %v224_v5, %v223_v2  ;;  %v539_v11 = vpack.c.bf16 (!%p190_p9), %v312_v10, %v311_v9  ;;  %v313_v12 = vld [vmem:[%s839_s3 + $0x10] sm:$0xff] (!%p190_p9)  ;;  %v314_v13 = vld [vmem:[%s839_s3 + $0x18] sm:$0xff] (!%p190_p9)  ;;  %v315_v15 = vld [vmem:[%s839_s3 + $0x20] sm:$0xff] (!%p190_p9)  ;;  %vm326_vm2 = vcmask (!%p190_p9), 523264   ;;  %s213_s26 = sand.u32 (!%p190_p9), 1, %s648_s19   ;;  %s485_s8 = sshll.u32 (!%p190_p9), %s713_s22, 7 }
  0x10   : > { %534 = vmatpush3.bf16.msra.mxu0 (!%p190_p9), %v533_v4  ;;  %v542_v14 = vpack.c.bf16 (!%p190_p9), %v314_v13, %v313_v12  ;;  %v316_v16 = vld [vmem:[%s839_s3 + $0x28] sm:$0xff] (!%p190_p9)  ;;  %v317_v18 = vld [vmem:[%s839_s3 + $0x30] sm:$0xff] (!%p190_p9)  ;;  %v318_v19 = vld [vmem:[%s839_s3 + $0x38] sm:$0xff] (!%p190_p9)  ;;  %s478_s30 = sshll.u32 (!%p190_p9), %s213_s26, 3 }
  0x11   : > { %535 = vmatprep.subr.bf16.mxu0 (!%p190_p9), %v658_v3  ;;  %540 = vmatpush3.bf16.msra.mxu1 (!%p190_p9), %v539_v11  ;;  %v545_v17 = vpack.c.bf16 (!%p190_p9), %v316_v16, %v315_v15  ;;  %v548_v20 = vpack.c.bf16 (!%p190_p9), %v318_v19, %v317_v18  ;;  %v480_v21 = vld [vmem:[%s838_s2] ss:$0 sm:$0xff] (!%p190_p9)  ;;  %s215_s9 = scalar_lea.vmem (!%p190_p9), [#allocation2], %s478_s30 }
  0x12   : > { %541 = vmatprep.subr.bf16.mxu1 (!%p190_p9), %v658_v3  ;;  %v482_v30 = vld [vmem:[%s840_s4] ss:$0 sm:$0xff] (!%p190_p9)  ;;  %s415_s10 = sshll.u32 (!%p190_p9), %s215_s9, 4  ;;  %s795_s10 = int_to_ptr.vmem [resolvable:$true] %s415_s10 }
  0x13   : > { %s594_s15 = scalar_lea.vmem (!%p190_p9), %s795_s10, 128 }
  0x14   : > { %537 = vmatpush3.bf16.msra.mxu0 (!%p190_p9), %v536_v7  ;;  %p595_p11 = scmp.ne.s32.totalorder (!%p190_p9), %s795_s10, %s594_s15 }
  0x15   : > { %s217_s13 = scalar_select %p216_p10, %s713_s22, 1  ;;  %543 = vmatpush3.bf16.msra.mxu1 %v542_v14 }
  0x16   : > { %544 = vmatprep.subr.bf16.mxu1 %v658_v3  ;;  %p596_p12 = pnand %p595_p11, %p730_p5  ;;  %s661_s22 = smov [#allocation2]  }
  0x17   : > { %s479_s14 = sshll.u32 %s217_s13, 3  ;;  %s793_s13 = scalar_lea.hbm %s841_s5, %s485_s8 }
  0x18   : > { %s219_s17 = scalar_lea.vmem %s836_s0, %s479_s14  ;;  %s402_s14 = scalar_lea.sflag [#allocation3], %s213_s26 }
  0x19   : > { %v220_v8 = vld [vmem:[%s219_s17] sm:$0xff]  ;;  %546 = vmatpush3.bf16.msra.mxu1 %v545_v17  ;;  %p597_p13 = pneg %p596_p12  ;;  %s598_s16 = sshll.u32 %s661_s22, 4  ;;  %s599_s16 = int_to_ptr.vmem [resolvable:$false] %s598_s16 }
  0x1a   : > { %511 = vmatmul.mubr.msk.f32.vlgmr.msra.gmra.mrb[0].mxu0 %vm232_vm1, %v220_v8  ;;  %547 = vmatprep.subr.bf16.mxu1 %v658_v3  ;;  %s600_s17 = scalar_lea.vmem %s599_s16, 256  ;;  %p601_p0 = scmp.lt.s32.totalorder %s795_s10, %s599_s16 }
  0x1b   : > { %p602_p1 = scmp.lt.s32.totalorder %s600_s17, %s594_s15 }
  0x1d   : > { %549 = vmatpush3.bf16.msra.mxu1 %v548_v20  ;;  %p603_p2 = por %p602_p1, %p601_p0 }
  0x1f   : > { %p604_p3 = pnand %p603_p2, %p597_p13 }
  0xed   : > { %v302_v22 = vpop.f32.mrb[0].mxu0 }
  0xee   : > { %v303_v23 = vadd.f32 %v480_v21, %v302_v22  ;;  %v512_v24 = vpop.f32.mrb[1].mxu0 }
  0xf0   : > { %v307_v25 = vmul.f32 0.70710677, %v303_v23  ;;  %v306_v27 = vmul.f32 0.5, %v303_v23 }
  0xf2   : > { %592 = verf.f32 %v307_v25 }
  0xfc   : > { %v593_v26 = vpop.eup %592 }
  0xfd   : > { %v309_v28 = vadd.f32 1.0, %v593_v26 }
  0xff   : > { %v310_v29 = vmul.f32 %v309_v28, %v306_v27 }
 0x101   : > { %530 = vmatmul.mubr.msk.f32.vlgmr.msra.gmra.mrb[0].mxu1 %vm326_vm2, %v310_v29 }
 0x1d4   : > { %v396_v31 = vpop.f32.mrb[0].mxu1 }
 0x1d5   : > { %v397_v32 = vadd.f32 %v482_v30, %v396_v31  ;;  %v531_v33 = vpop.f32.mrb[1].mxu1 }
 0x1d7   : > { %400 = vst.msk [vmem:[%s215_s9] sm:$0xff] %vm232_vm1, %v397_v32 }
 0x1d8   : > { %607 = shalt.err (!%p604_p3)
}
 0x1d9   : > { %s608_s23 = scalar_lea.hbm %s793_s13, 128  ;;  %s612_s30 = scalar_lea.hbm %s841_s5, 256 }
 0x1da   : > { %p609_p4 = scmp.ne.s32.totalorder %s793_s13, %s608_s23  ;;  %p613_p9 = scmp.lt.u32.totalorder %s793_s13, %s841_s5 }
 0x1db   : > { %p614_p10 = scmp.lt.u32.totalorder %s612_s30, %s608_s23  ;;  %p616_p12 = scmp.lt.u32.totalorder %s608_s23, %s793_s13 }
 0x1dc   : > { %p610_p7 = pnand %p609_p4, %p730_p5 }
 0x1dd   : > { %p615_p11 = por %p614_p10, %p613_p9 }
 0x1de   : > { %p611_p8 = pneg %p610_p7 }
 0x1df   : > { %p617_p13 = por %p616_p12, %p615_p11 }
 0x1e1   : > { %p618_p0 = pnand %p617_p13, %p611_p8 }
 0x1e3   : > { %621 = shalt.err (!%p618_p0)
}
 0x1e4   : > { %550 = dma.vmem_to_hbm [thread:$0]  (%p730_p5), %s795_s10, 128, %s793_s13, %s402_s14  }
 0x1e5 PF: > { %p556_p1 = scmp.ge.s32.totalorder %s656_s21, 2  ;;  %s427_s8 = sand.u32 1, %s644_s18  }
 0x1e6   : > { %s428_s9 = scalar_lea.sflag [#allocation3], %s427_s8 }
 0x1e7   : > { %p553_p2 = pnand %p556_p1, %p734_p6 }
 0x1e9   : > { %639 = dma.done.wait (!%p553_p2), %s428_s9, 128  }
 0x1ea   : > { %641 = vsyncadd (!%p553_p2), %s428_s9, 4294967168  ;;  %p15_p3 = scmp.ge.s32.totalorder %s717_s24, 4   ;;  %s844_s18 = smov %s648_s19 }
 0x1eb   : > { %s845_s19 = smov %s652_s20  ;;  %s846_s20 = smov %s728_s27 }
 0x1ec   : > { %s847_s21 = smov %s717_s24  ;;  %17 = sbr.rel (!%p15_p3) target bundleno = 3 (0x3), region = 75 }
 0x1f3   :  { %433 = vsyncpa [#allocation3], 1 }
 0x1f4   :  { %435 = vsyncpa [#allocation3 + $0x1], 1 }

</bundles_post_ra>
